<compile_context>
chip_gen: v7x
topology: tpu7x:2x2x1
jax: 0.10.0
libtpu: 0.0.40
codegen_flags: <defaults>
</compile_context>

<pallas_src>
import jax
import jax.numpy as jnp
from jax import lax
from jax.experimental import pallas as pl
from jax.experimental.pallas import tpu as pltpu


_LANE = 128      # vreg lane width (last dim)
_SUBLANE = 8     # f32 sublane count (second-to-last dim)


def _round_up(n, m):
    return ((n + m - 1) // m) * m


# ----------------------------------------------------------------------------
# Kernels
# ----------------------------------------------------------------------------
def _eddy_cell_step_kernel(x_ref, h_ref, wx_ref, wh_ref, out_ref):
    # x  : (B, I)        unpadded activations (whole-array VMEM blocks)
    # h  : (B, H)        unpadded hidden state
    # wx : (I, H_pad)    columns zero-padded to the 128-lane width
    # wh : (H, H_pad)    columns zero-padded
    # out: (B, H_pad)    lane-dense store; wrapper slices [:, :H]
    z = jnp.dot(x_ref[...], wx_ref[...], preferred_element_type=jnp.float32)
    z = z + jnp.dot(h_ref[...], wh_ref[...], preferred_element_type=jnp.float32)
    out_ref[...] = jax.nn.sigmoid(z).astype(out_ref.dtype)


def _eddy_cell_seq_kernel(x_ref, h0_ref, wx_ref, wh_ref, out_ref, h_acc):
    # One grid step processes a chunk of Tc timesteps (default: all of them).
    #   x_ref  : (Tc*B, I)       flattened chunk inputs
    #   h0_ref : (B, H)          initial hidden state (unpadded, tiny)
    #   wx_ref : (I, H_pad)      resident weights (constant index map)
    #   wh_ref : (H_pad, H_pad)  resident weights; padded rows/cols are zero
    #   out_ref: (Tc*B, H_pad)   per-step hidden states, lane-dense
    #   h_acc  : VMEM (B, H_pad) f32 — hidden-state carry across chunks
    c = pl.program_id(0)
    B, H = h0_ref.shape
    Tc = x_ref.shape[0] // B

    @pl.when(c == 0)
    def _():
        h_acc[...] = jnp.zeros_like(h_acc)
        h_acc[:, :H] = h0_ref[...].astype(jnp.float32)

    # Hoisted non-recurrent matmul: one (Tc*B, I) @ (I, H_pad) MXU push
    # instead of Tc tiny 8-row pushes; staged in the output block itself.
    out_ref[...] = jnp.dot(
        x_ref[...], wx_ref[...], preferred_element_type=jnp.float32
    ).astype(out_ref.dtype)

    wh = wh_ref[...]

    def step(t, h):
        zx = out_ref[pl.ds(t * B, B), :].astype(jnp.float32)
        z = zx + jnp.dot(h, wh, preferred_element_type=jnp.float32)
        h_new = jax.nn.sigmoid(z)
        out_ref[pl.ds(t * B, B), :] = h_new.astype(out_ref.dtype)
        return h_new

    # Fully unrolled in-kernel time loop (Tc is small and static).
    h_acc[...] = lax.fori_loop(0, Tc, step, h_acc[...], unroll=True)


# ----------------------------------------------------------------------------
# Wrappers
# ----------------------------------------------------------------------------
def eddy_cell_forward(x, hidden, wx_p, wh_p, hidden_size):
    """One EddyCell step. x:(B,I), hidden:(B,H) -> (B,H)."""
    B = x.shape[0]
    H_pad = wx_p.shape[1]
    out = pl.pallas_call(
        _eddy_cell_step_kernel,
        out_shape=jax.ShapeDtypeStruct((B, H_pad), x.dtype),
        in_specs=[pl.BlockSpec(memory_space=pltpu.MemorySpace.VMEM)] * 4,
        out_specs=pl.BlockSpec(memory_space=pltpu.MemorySpace.VMEM),
    )(x, hidden, wx_p, wh_p)
    return out[:, :hidden_size]


def eddy_cell_sequence(x_seq, h0, wx_p, wh_pp, hidden_size, t_chunk=None):
    """Run the whole recurrence with (at most) a handful of grid steps.

    x_seq:(T,B,I), h0:(B,H) -> (T,B,H)  (hidden state after every step).
    Default t_chunk=T puts the entire recurrence in a single kernel
    invocation; for very long sequences pass a divisor of T to chunk it
    (keeps VMEM bounded; hidden state is carried across chunks in scratch).
    """
    T, B, I = x_seq.shape
    H_pad = wx_p.shape[1]

    # Keep the batch a sublane multiple so the flattened (T*B, H_pad) output
    # slabs stay tile-aligned (no-op at B=8).
    B_pad = _round_up(max(B, _SUBLANE), _SUBLANE)
    if B_pad != B:
        x_seq = jnp.pad(x_seq, ((0, 0), (0, B_pad - B), (0, 0)))
        h0 = jnp.pad(h0, ((0, B_pad - B), (0, 0)))

    if t_chunk is None:
        t_chunk = T
    assert T % t_chunk == 0, "t_chunk must divide T"
    n_chunks = T // t_chunk

    x2d = x_seq.reshape(T * B_pad, I)   # contiguous -> free reshape

    out = pl.pallas_call(
        _eddy_cell_seq_kernel,
        out_shape=jax.ShapeDtypeStruct((T * B_pad, H_pad), x_seq.dtype),
        grid=(n_chunks,),
        in_specs=[
            pl.BlockSpec((t_chunk * B_pad, I), lambda c: (c, 0)),
            pl.BlockSpec((B_pad, h0.shape[1]), lambda c: (0, 0)),
            pl.BlockSpec((I, H_pad), lambda c: (0, 0)),
            pl.BlockSpec((H_pad, H_pad), lambda c: (0, 0)),
        ],
        out_specs=pl.BlockSpec((t_chunk * B_pad, H_pad), lambda c: (c, 0)),
        scratch_shapes=[pltpu.VMEM((B_pad, H_pad), jnp.float32)],
        compiler_params=pltpu.CompilerParams(
            dimension_semantics=("arbitrary",)),
    )(x2d, h0, wx_p, wh_pp)
    return out.reshape(T, B_pad, H_pad)[:, :B, :hidden_size]


class EddyCellPallas:
    """Deterministically-initialized Pallas equivalent of EddyCell."""

    def __init__(self, input_size, hidden_size, output_size=1, seed=0):
        self.input_size = input_size
        self.hidden_size = hidden_size
        self.output_size = output_size

        key = jax.random.PRNGKey(seed)
        k1, k2 = jax.random.split(key)
        # nn.Linear default init: U(-1/sqrt(fan_in), 1/sqrt(fan_in)).
        bx = 1.0 / (input_size ** 0.5)
        bh = 1.0 / (hidden_size ** 0.5)
        # Stored transposed relative to torch (W^T) so kernels do plain
        # row-major [B,K] @ [K,H] MXU matmuls.
        self.wx_t = jax.random.uniform(
            k1, (input_size, hidden_size), jnp.float32, minval=-bx, maxval=bx)
        self.wh_t = jax.random.uniform(
            k2, (hidden_size, hidden_size), jnp.float32, minval=-bh, maxval=bh)

        H_pad = _round_up(max(hidden_size, _LANE), _LANE)
        self.H_pad = H_pad
        pad_h = H_pad - hidden_size
        # Column-padded weights (single-step path: activations are unpadded).
        self.wx_p = jnp.pad(self.wx_t, ((0, 0), (0, pad_h)))
        self.wh_p = jnp.pad(self.wh_t, ((0, 0), (0, pad_h)))
        # Row+column padded Wh (sequence path: h carries in padded lanes).
        self.wh_pp = jnp.pad(self.wh_t, ((0, pad_h), (0, pad_h)))

    def __call__(self, x, hidden):
        return eddy_cell_forward(x, hidden, self.wx_p, self.wh_p,
                                 self.hidden_size)

    def run_sequence(self, x_seq, hidden0, t_chunk=None):
        return eddy_cell_sequence(x_seq, hidden0, self.wx_p, self.wh_pp,
                                  self.hidden_size, t_chunk=t_chunk)


if __name__ == "__main__":
    batch = 8
    input_size = 4      # features: (B, dB/dt, F, T)
    hidden_size = 32    # eddy-current layers
    seq_len = 16

    cell = EddyCellPallas(input_size, hidden_size, seed=0)

    key = jax.random.PRNGKey(0)
    kx, kh, ks = jax.random.split(key, 3)
    x = jax.random.normal(kx, (batch, input_size), jnp.float32)
    hidden = jax.random.normal(kh, (batch, hidden_size), jnp.float32)
    x_seq = jax.random.normal(ks, (seq_len, batch, input_size), jnp.float32)

    # --- single step (exact module forward) ---
    out = jax.block_until_ready(cell(x, hidden))
    ref = jax.nn.sigmoid(x @ cell.wx_t + hidden @ cell.wh_t)
    assert out.shape == (batch, hidden_size)
    assert jnp.allclose(out, ref, atol=1e-5, rtol=1e-5)

    # --- whole recurrence inside one kernel invocation ---
    outs = jax.block_until_ready(cell.run_sequence(x_seq, hidden))
    assert outs.shape == (seq_len, batch, hidden_size)
    h_ref = hidden
    for t in range(seq_len):
        h_ref = jax.nn.sigmoid(x_seq[t] @ cell.wx_t + h_ref @ cell.wh_t)
        assert jnp.allclose(outs[t], h_ref, atol=1e-5, rtol=1e-5)

    print("KERNEL_OK")
</pallas_src>

<mosaic_0001>
module attributes {stable_mosaic.version = 11 : i64} {
  func.func @_eddy_cell_step_kernel(%arg0: memref<8x4xf32, #tpu.memory_space<vmem>>, %arg1: memref<8x32xf32, #tpu.memory_space<vmem>>, %arg2: memref<4x128xf32, #tpu.memory_space<vmem>>, %arg3: memref<32x128xf32, #tpu.memory_space<vmem>>, %arg4: memref<8x128xf32, #tpu.memory_space<vmem>>) attributes {dimension_semantics = [], scalar_prefetch = 0 : i64, scratch_operands = 0 : i64, tpu.core_type = #tpu.core_type<tc>} {
    %c0 = arith.constant 0 : index
    %c0_0 = arith.constant 0 : index
    %0 = vector.load %arg0[%c0, %c0_0] : memref<8x4xf32, #tpu.memory_space<vmem>>, vector<8x4xf32>
    %c0_1 = arith.constant 0 : index
    %c0_2 = arith.constant 0 : index
    %1 = vector.load %arg2[%c0_1, %c0_2] : memref<4x128xf32, #tpu.memory_space<vmem>>, vector<4x128xf32>
    %cst = arith.constant dense<0.000000e+00> : vector<8x128xf32>
    %2 = tpu.matmul %0, %1, %cst {dimension_numbers = #tpu.dot_dimension_numbers<[1], [0], [0], [1], [0, 0, 1, 1], [], []>} : vector<8x4xf32>, vector<4x128xf32>, vector<8x128xf32> -> vector<8x128xf32>
    %c0_3 = arith.constant 0 : index
    %c0_4 = arith.constant 0 : index
    %3 = vector.load %arg1[%c0_3, %c0_4] : memref<8x32xf32, #tpu.memory_space<vmem>>, vector<8x32xf32>
    %c0_5 = arith.constant 0 : index
    %c0_6 = arith.constant 0 : index
    %4 = vector.load %arg3[%c0_5, %c0_6] : memref<32x128xf32, #tpu.memory_space<vmem>>, vector<32x128xf32>
    %cst_7 = arith.constant dense<0.000000e+00> : vector<8x128xf32>
    %5 = tpu.matmul %3, %4, %cst_7 {dimension_numbers = #tpu.dot_dimension_numbers<[1], [0], [0], [1], [0, 0, 1, 1], [], []>} : vector<8x32xf32>, vector<32x128xf32>, vector<8x128xf32> -> vector<8x128xf32>
    %6 = arith.addf %2, %5 : vector<8x128xf32>
    %7 = arith.negf %6 : vector<8x128xf32>
    %8 = math.exp %7 : vector<8x128xf32>
    %cst_8 = arith.constant 1.000000e+00 : f32
    %9 = vector.broadcast %cst_8 : f32 to vector<8x128xf32>
    %10 = arith.addf %9, %8 : vector<8x128xf32>
    %11 = arith.divf %9, %10 : vector<8x128xf32>
    %c0_9 = arith.constant 0 : index
    %c0_10 = arith.constant 0 : index
    %12 = vector.load %arg4[%c0_9, %c0_10] : memref<8x128xf32, #tpu.memory_space<vmem>>, vector<8x128xf32>
    tpu.vector_store %arg4[%c0_9, %c0_10], %11 {strides = array<i32>} : memref<8x128xf32, #tpu.memory_space<vmem>>, vector<8x128xf32>,
    return
  }
}

</mosaic_0001>

<bundles_post_ra>
// kernel: tpu_custom_call.1
= control target key start
LH: loop header
LB: loop body
LE: loop exit
PB: predicated region body
PF: predicated region fallthrough
CT: control target
= control target key end

     0   :  { %9 = vsyncpa [#allocation3], 0  ;;  %s371_s0 = inlined_call_operand.vmem [shape: f32[8,4], index: 0, kind: input, shape index: {}]   ;;  %s372_s1 = inlined_call_operand.vmem [shape: f32[8,32], index: 1, kind: input, shape index: {}]   ;;  %s373_s2 = inlined_call_operand.vmem [shape: f32[4,128], index: 2, kind: input, shape index: {}]   ;;  %s374_s3 = inlined_call_operand.hbm [shape: f32[32,128], index: 3, kind: input, shape index: {}]   ;;  %s375_s4 = inlined_call_operand.hbm [shape: f32[8,128], index: 4, kind: output, shape index: {}]  }
   0x1   :  { %10 = vsyncpa [#allocation4], 0  ;;  %s306_s15 = smov [#allocation2]   ;;  %s258_s19 = scalar_lea.hbm %s374_s3, 512 }
   0x2   :  { %s22_s16 = sshll.u32 %s306_s15, 4  ;;  %p259_p0 = scmp.ne.s32.totalorder %s374_s3, %s258_s19  ;;  %s23_s16 = int_to_ptr.vmem [resolvable:$true] %s22_s16 }
   0x3   :  { %p262_p1 = scmp.lt.u32.totalorder %s258_s19, %s374_s3 }
   0x5   :  { %p264_p2 = pnand %p262_p1, %p259_p0 }
   0x7   :  { %267 = shalt.err (!%p264_p2)
}
   0x8   :  { %s268_s24 = scalar_lea.vmem %s23_s16, 512  ;;  %p273_p4 = scmp.lt.s32.totalorder %s23_s16, %s23_s16 }
   0x9   :  { %p269_p3 = scmp.ne.s32.totalorder %s23_s16, %s268_s24  ;;  %p274_p5 = scmp.lt.s32.totalorder %s268_s24, %s268_s24 }
   0xb   :  { %p275_p6 = por %p274_p5, %p273_p4 }
   0xd   :  { %p276_p7 = pnand %p275_p6, %p269_p3 }
   0xf   :  { %279 = shalt.err (!%p276_p7)
}
  0x10   :  { %s307_s25 = smov 128   ;;  %s308_s26 = smov 8  }
  0x11   :  { %28 = dma.hbm_to_vmem [thread:$0]  %s374_s3, 512, %s23_s16, [#allocation3], %s307_s25, %s307_s25, %s308_s26  }
  0x12   :  { %302 = dma.done.wait [#allocation3], 512  }
  0x13   :  { %303 = vsyncadd [#allocation3], 4294966784  ;;  %v309_v0 = vmov 0.0|0.0   ;;  %v310_v1 = vmov 0.0   ;;  %vm311_vm0 = vmmov 0   ;;  %vm117_vm1 = vcmask 1043456  }
  0x14   :  { %240 = vmatprep.subr.bf16.mxu1 %v309_v0  ;;  %235 = vmatprep.subr.mxu0 %v310_v1  ;;  %v35_v2 = vld [vmem:[#allocation2] sm:$0xff]  ;;  %v36_v3 = vld [vmem:[#allocation2 + $0x8] sm:$0xff]  ;;  %v37_v4 = vld [vmem:[#allocation2 + $0x10] sm:$0xff]  ;;  %vm113_vm2 = vcmask 31744   ;;  %vm39_vm3 = vcmask 261120  }
  0x15   :  { %237 = vmatprep.mubr.msk.f32.mxu0 %vm311_vm0, %v310_v1  ;;  %232 = vmatprep.mubr.msk.f32.mxu1 %vm311_vm0, %v310_v1  ;;  %v241_v5 = vpack.c.bf16 %v36_v3, %v35_v2  ;;  %v38_v6 = vld [vmem:[#allocation2 + $0x18] sm:$0xff]  ;;  %v33_v7 = vld [vmem:[%s373_s2] sm:$0xf] }
  0x16   :  { %v32_v8 = vld [vmem:[%s371_s0] sm:$0xff]  ;;  %236 = vmatpush3.msk.msra.mxu0 %vm117_vm1, %v33_v7  ;;  %v244_v9 = vpack.c.bf16 %v38_v6, %v37_v4  ;;  %s312_s0 = smov [#allocation5]  }
  0x17   :  { %242 = vmatpush3.bf16.msra.mxu1 %v241_v5  ;;  %238 = vmatmul.mubr.msk.f32.vlgmr.msra.gmra.mrb[0].mxu0 %vm113_vm2, %v32_v8  ;;  %v34_v10 = vld [vmem:[%s372_s1] sm:$0xff]  ;;  %s204_s2 = sshll.u32 %s312_s0, 4  ;;  %s205_s2 = int_to_ptr.vmem [resolvable:$true] %s204_s2 }
  0x18   :  { %243 = vmatprep.subr.bf16.mxu1 %v309_v0  ;;  %s280_s8 = scalar_lea.vmem %s205_s2, 128  ;;  %p285_p9 = scmp.lt.s32.totalorder %s205_s2, %s205_s2 }
  0x19   :  { %p281_p8 = scmp.ne.s32.totalorder %s205_s2, %s280_s8  ;;  %p286_p10 = scmp.lt.s32.totalorder %s280_s8, %s280_s8 }
  0x1b   :  { %245 = vmatpush3.bf16.msra.mxu1 %v244_v9  ;;  %p287_p11 = por %p286_p10, %p285_p9 }
  0x1d   :  { %p288_p12 = pnand %p287_p11, %p281_p8 }
  0x1e   :  { %233 = vmatmul.mubr.msk.f32.vlgmr.msra.gmra.mrb[0].mxu1 %vm39_vm3, %v34_v10 }
  0xea   :  { %v187_v11 = vpop.f32.mrb[0].mxu0 }
  0xeb   :  { %v239_v12 = vpop.f32.mrb[1].mxu0 }
  0xf1   :  { %v109_v13 = vpop.f32.mrb[0].mxu1 }
  0xf2   :  { %v188_v14 = vadd.f32 %v187_v11, %v109_v13  ;;  %v234_v15 = vpop.f32.mrb[1].mxu1 }
  0xf4   :  { %v216_v16 = vmul.f32 -1.442695, %v188_v14 }
  0xf6   :  { %254 = vpow2.f32 %v216_v16 }
 0x100   :  { %v255_v17 = vpop.eup %254 }
 0x101   :  { %v194_v18 = vadd.f32 1.0, %v255_v17 }
 0x103   :  { %256 = vrcp.f32 %v194_v18 }
 0x10d   :  { %v257_v19 = vpop.eup %256 }
 0x10e   :  { %197 = vst [vmem:[#allocation5] sm:$0xff] %v257_v19 }
 0x10f   :  { %291 = shalt.err (!%p288_p12)
}
 0x110   :  { %s292_s10 = scalar_lea.hbm %s375_s4, 128 }
 0x111   :  { %p293_p13 = scmp.ne.s32.totalorder %s375_s4, %s292_s10  ;;  %p296_p0 = scmp.lt.u32.totalorder %s292_s10, %s375_s4 }
 0x113   :  { %p298_p1 = pnand %p296_p0, %p293_p13 }
 0x115   :  { %301 = shalt.err (!%p298_p1)
}
 0x116   :  { %207 = dma.vmem_to_hbm [thread:$0]  %s205_s2, 128, %s375_s4, [#allocation4]  }
 0x117   :  { %304 = dma.done.wait [#allocation4], 128  }
 0x118   :  { %305 = vsyncadd [#allocation4], 4294967168 }
 0x119   :  { %211 = vsyncpa [#allocation3], 1 }
 0x11a   :  { %212 = vsyncpa [#allocation4], 1 }

</bundles_post_ra>
